<compile_context>
chip_gen: v5e
topology: v5e:2x2
jax: 0.10.0
libtpu: 0.0.40
codegen_flags: <defaults>
</compile_context>

<pallas_src>
import jax
import jax.numpy as jnp
from jax.experimental import pallas as pl
from jax.experimental.pallas import tpu as pltpu


_LANE = 128


def _round_up(x, m):
    return (x + m - 1) // m * m


def _vmem_capacity_bytes():
    try:
        return int(pltpu.get_tpu_info().vmem_capacity_bytes)
    except Exception:
        return 64 * 1024 * 1024  # conservative fallback (v7x physical VMEM)


def _tile_budget_bytes(capacity):
    if capacity >= 100 * 1024 * 1024:
        # v5e / v6e: 128 MiB physical -> use most of it for bigger row tiles.
        return 96 * 1024 * 1024
    # v7x: 64 MiB physical -> keep >= 24 MiB headroom for internal scratch.
    return max(capacity - 24 * 1024 * 1024, 24 * 1024 * 1024)


def _choose_row_tile(N, per_tile_bytes, budget_bytes, allow_full_row):
    """Largest row tile whose double-buffered working set fits `budget_bytes`."""
    candidates = []
    if allow_full_row or N <= 128:
        candidates.append(N)
    # 256-aligned candidates (match 2x256^2 MXU on v6e/v7x) plus a 128 fallback.
    candidates += [c for c in (2048, 1024, 512, 256, 128) if c < N]
    for tn in candidates:
        if per_tile_bytes(tn) <= budget_bytes:
            return tn
    # TODO(synk): for N so large that even a 128-row adj tile overflows VMEM,
    # add an adj-column (K) grid axis with an f32 accumulator scratch.
    return min(N, 128)


# ---------------------------------------------------------------------------
# Kernel 1: fused hypernetwork (per-batch w1/w2/b1/b2 in one pallas_call)
# ---------------------------------------------------------------------------

def _make_hypernet_kernel(weights_operation):
    def kernel(s_ref,
               w1aw_ref, w1ab_ref, w1bw_ref, w1bb_ref,
               w2aw_ref, w2ab_ref, w2bw_ref, w2bb_ref,
               b1w_ref, b1b_ref, b2w_ref, b2b_ref,
               w1_ref, w2_ref, b1_ref, b2_ref):
        s = s_ref[...]
        # w1 hypernet: Linear -> ReLU -> Linear
        h1 = jnp.maximum(
            jnp.dot(s, w1aw_ref[...], preferred_element_type=jnp.float32) + w1ab_ref[...],
            0.0)
        w1 = jnp.dot(h1, w1bw_ref[...], preferred_element_type=jnp.float32) + w1bb_ref[...]
        # w2 hypernet: Linear -> ReLU -> Linear
        h2 = jnp.maximum(
            jnp.dot(s, w2aw_ref[...], preferred_element_type=jnp.float32) + w2ab_ref[...],
            0.0)
        w2 = jnp.dot(h2, w2bw_ref[...], preferred_element_type=jnp.float32) + w2bb_ref[...]
        # weights_operation fused here (VPU filler).  Note PyTorch 'clamp' is
        # nn.ReLU, i.e. max(w, 0) with no upper bound -> matches.
        if weights_operation == "abs":
            w1 = jnp.abs(w1)
            w2 = jnp.abs(w2)
        elif weights_operation == "clamp":
            w1 = jnp.maximum(w1, 0.0)
            w2 = jnp.maximum(w2, 0.0)
        # bias hypernets (plain Linear)
        b1 = jnp.dot(s, b1w_ref[...], preferred_element_type=jnp.float32) + b1b_ref[...]
        b2 = jnp.dot(s, b2w_ref[...], preferred_element_type=jnp.float32) + b2b_ref[...]
        w1_ref[...] = w1.astype(w1_ref.dtype)
        w2_ref[...] = w2.astype(w2_ref.dtype)
        b1_ref[...] = b1.astype(b1_ref.dtype)
        b2_ref[...] = b2.astype(b2_ref.dtype)
    return kernel


def hypernet_generate(params, states, weights_operation):
    """Single fused pallas_call -> (w1_flat bf16, w2_flat bf16, b1 f32, b2 f32)."""
    B = states.shape[0]
    Fin = params["in_features"]
    H = params["hidden_features"]
    Fout = params["out_features"]
    E = params["w1_a_w"].shape[1]

    operands = (states,
                params["w1_a_w"], params["w1_a_b"], params["w1_b_w"], params["w1_b_b"],
                params["w2_a_w"], params["w2_a_b"], params["w2_b_w"], params["w2_b_b"],
                params["b1_w"], params["b1_b"], params["b2_w"], params["b2_b"])

    # No grid -> everything resident at once; size the scoped VMEM explicitly.
    # TODO(synk): tile the Fin*H / H*Fout column dims for very large hypernets.
    in_bytes = sum(int(a.size) * a.dtype.itemsize for a in operands)
    out_bytes = B * (Fin * H + H * Fout) * 2 + B * (H + Fout) * 4
    interm_bytes = B * (Fin * H + H * Fout) * 4 + 2 * B * E * 4
    capacity = _vmem_capacity_bytes()
    est = in_bytes + out_bytes + interm_bytes
    vmem_limit = int(min(max(est + (8 << 20), 32 << 20), capacity))

    vmem = pl.BlockSpec(memory_space=pltpu.MemorySpace.VMEM)
    out_shape = (
        jax.ShapeDtypeStruct((B, Fin * H), jnp.bfloat16),   # w1 flat (bf16 MXU operand)
        jax.ShapeDtypeStruct((B, H * Fout), jnp.bfloat16),  # w2 flat
        jax.ShapeDtypeStruct((B, H), jnp.float32),          # b1 (f32 epilogue)
        jax.ShapeDtypeStruct((B, Fout), jnp.float32),       # b2
    )
    return pl.pallas_call(
        _make_hypernet_kernel(weights_operation),
        out_shape=out_shape,
        in_specs=[vmem] * 13,
        out_specs=(vmem, vmem, vmem, vmem),
        compiler_params=pltpu.CompilerParams(vmem_limit_bytes=vmem_limit),
    )(*operands)


# ---------------------------------------------------------------------------
# Kernel 2: xw1 precompute (once per batch, removes per-row-tile recomputation)
# ---------------------------------------------------------------------------

def _xw1_kernel(x_ref, w1_ref, out_ref):
    out_ref[...] = jnp.dot(x_ref[...], w1_ref[...],
                           preferred_element_type=jnp.float32).astype(out_ref.dtype)


def xw1_precompute(x, w1):
    """xw1[b] = x[b] @ w1[b]  -> (B, N, Hp) bf16, gridded over (batch, row tiles)."""
    B, N, Fin = x.shape
    Hp = w1.shape[-1]
    capacity = _vmem_capacity_bytes()
    budget = _tile_budget_bytes(capacity)

    def per_tile(tn):
        return 2 * (tn * Fin * 2 + Fin * Hp * 2 + tn * Hp * 2)

    allow_full_row = (B >= 2) or (N <= 128)
    TN = _choose_row_tile(N, per_tile, budget, allow_full_row)
    est = per_tile(TN)
    vmem_limit = int(min(max(est + (4 << 20), 32 << 20), capacity))

    return pl.pallas_call(
        _xw1_kernel,
        out_shape=jax.ShapeDtypeStruct((B, N, Hp), jnp.bfloat16),
        grid=(B, pl.cdiv(N, TN)),
        in_specs=[pl.BlockSpec((None, TN, Fin), lambda b, r: (b, r, 0)),
                  pl.BlockSpec((None, Fin, Hp), lambda b, r: (b, 0, 0))],
        out_specs=pl.BlockSpec((None, TN, Hp), lambda b, r: (b, r, 0)),
        compiler_params=pltpu.CompilerParams(
            dimension_semantics=("parallel", "parallel"),
            vmem_limit_bytes=vmem_limit),
    )(x, w1)


# ---------------------------------------------------------------------------
# Kernel 3: GIN convolution hot path (gridded over batch x node-row tiles)
# ---------------------------------------------------------------------------

def _gin_conv_xw1_kernel(xw1_ref, adj_ref, b1_ref, w2_ref, b2_ref, out_ref):
    # xw1 (N, Hp) bf16, adj (TN, N) bf16/int8, b1 (1, Hp) f32, w2 (Hp, Fp) bf16,
    # b2 (1, Fp) f32, out (TN, Fp).  adj upcast to bf16 in-kernel (VPU, hides
    # under DMA) so the HBM stream can be int8.
    a = adj_ref[...].astype(jnp.bfloat16)
    h = jnp.dot(a, xw1_ref[...], preferred_element_type=jnp.float32) + b1_ref[...]
    h = jnp.where(h >= 0.0, h, 0.01 * h)                       # LeakyReLU(0.01)
    o = jnp.dot(h.astype(w2_ref.dtype), w2_ref[...],
                preferred_element_type=jnp.float32) + b2_ref[...]
    out_ref[...] = o.astype(out_ref.dtype)


def _gin_conv_agg_kernel(x_ref, adj_ref, w1_ref, b1_ref, w2_ref, b2_ref, out_ref):
    # Original association (adj @ x) @ w1 -- used when H > Fin; no per-tile
    # recomputation since agg depends on the adj row tile.
    a = adj_ref[...].astype(jnp.bfloat16)
    agg = jnp.dot(a, x_ref[...], preferred_element_type=jnp.float32)
    h = jnp.dot(agg.astype(w1_ref.dtype), w1_ref[...],
                preferred_element_type=jnp.float32) + b1_ref[...]
    h = jnp.where(h >= 0.0, h, 0.01 * h)
    o = jnp.dot(h.astype(w2_ref.dtype), w2_ref[...],
                preferred_element_type=jnp.float32) + b2_ref[...]
    out_ref[...] = o.astype(out_ref.dtype)


def gin_conv(adj_q, b1, w2, b2, *, xw1=None, x=None, w1=None, out_dtype=jnp.float32):
    """LeakyReLU(adj @ x @ w1 + b1) @ w2 + b2, lane-padded H/Fout, row-tiled."""
    B, N, _ = adj_q.shape
    Hp, Fp = w2.shape[1], w2.shape[2]
    adj_bytes = jnp.dtype(adj_q.dtype).itemsize
    out_bytes = jnp.dtype(out_dtype).itemsize
    capacity = _vmem_capacity_bytes()
    budget = _tile_budget_bytes(capacity)
    use_xw1 = xw1 is not None

    if use_xw1:
        def per_tile(tn):
            return 2 * (tn * N * adj_bytes + N * Hp * 2 + Hp * 4
                        + Hp * Fp * 2 + Fp * 4 + tn * Fp * out_bytes)
    else:
        Fin = x.shape[-1]
        def per_tile(tn):
            return 2 * (tn * N * adj_bytes + N * Fin * 2 + Fin * Hp * 2 + Hp * 4
                        + Hp * Fp * 2 + Fp * 4 + tn * Fp * out_bytes)

    # Keep at least 2 programs when B == 1 so a v7x TC isn't left idle.
    allow_full_row = (B >= 2) or (N <= 128)
    TN = _choose_row_tile(N, per_tile, budget, allow_full_row)
    grid = (B, pl.cdiv(N, TN))
    est = per_tile(TN)
    vmem_limit = int(min(max(est + (4 << 20), 32 << 20), capacity))

    adj_spec = pl.BlockSpec((None, TN, N), lambda b, r: (b, r, 0))
    b1_spec = pl.BlockSpec((None, 1, Hp), lambda b, r: (b, 0, 0))
    w2_spec = pl.BlockSpec((None, Hp, Fp), lambda b, r: (b, 0, 0))
    b2_spec = pl.BlockSpec((None, 1, Fp), lambda b, r: (b, 0, 0))
    out_spec = pl.BlockSpec((None, TN, Fp), lambda b, r: (b, r, 0))
    cparams = pltpu.CompilerParams(
        dimension_semantics=("parallel", "parallel"),
        vmem_limit_bytes=vmem_limit)
    out_shape = jax.ShapeDtypeStruct((B, N, Fp), out_dtype)

    if use_xw1:
        return pl.pallas_call(
            _gin_conv_xw1_kernel,
            out_shape=out_shape,
            grid=grid,
            in_specs=[pl.BlockSpec((None, N, Hp), lambda b, r: (b, 0, 0)),  # xw1
                      adj_spec, b1_spec, w2_spec, b2_spec],
            out_specs=out_spec,
            compiler_params=cparams,
        )(xw1, adj_q, b1, w2, b2)

    Fin = x.shape[-1]
    return pl.pallas_call(
        _gin_conv_agg_kernel,
        out_shape=out_shape,
        grid=grid,
        in_specs=[pl.BlockSpec((None, N, Fin), lambda b, r: (b, 0, 0)),     # x
                  adj_spec,
                  pl.BlockSpec((None, Fin, Hp), lambda b, r: (b, 0, 0)),    # w1
                  b1_spec, w2_spec, b2_spec],
        out_specs=out_spec,
        compiler_params=cparams,
    )(x, adj_q, w1, b1, w2, b2)


# ---------------------------------------------------------------------------
# Module: parameter init + forward
# ---------------------------------------------------------------------------

def init_gin_params(key, in_features, out_features, state_dim, hypernet_embed):
    """Deterministic synthetic init (shapes match the PyTorch module's __init__)."""
    hidden = int((in_features + out_features) / 2)

    def _lin(k, fan_in, fan_out):
        kw, kb = jax.random.split(k)
        bound = 1.0 / jnp.sqrt(fan_in)
        w = jax.random.uniform(kw, (fan_in, fan_out), jnp.float32, -bound, bound)
        b = jax.random.uniform(kb, (1, fan_out), jnp.float32, -bound, bound)
        return w, b

    keys = jax.random.split(key, 6)
    p = {}
    p["w1_a_w"], p["w1_a_b"] = _lin(keys[0], state_dim, hypernet_embed)
    p["w1_b_w"], p["w1_b_b"] = _lin(keys[1], hypernet_embed, in_features * hidden)
    p["w2_a_w"], p["w2_a_b"] = _lin(keys[2], state_dim, hypernet_embed)
    p["w2_b_w"], p["w2_b_b"] = _lin(keys[3], hypernet_embed, hidden * out_features)
    p["b1_w"], p["b1_b"] = _lin(keys[4], state_dim, hidden)
    p["b2_w"], p["b2_b"] = _lin(keys[5], state_dim, out_features)
    p["in_features"] = in_features
    p["out_features"] = out_features
    p["hidden_features"] = hidden
    return p


def gin_graph_convolution_forward(params, input_features, adj, states,
                                  weights_operation=None, adj_is_small_int=False):
    """Forward pass.  `adj_is_small_int=True` ships the adjacency as int8
    (exact for GIN-style {0,1,2} adjacency with self loops) to halve the
    dominant HBM stream; leave False for arbitrary float adjacency."""
    if weights_operation not in (None, "abs", "clamp"):
        raise NotImplementedError(
            "The operation {} on the weights not implemented".format(weights_operation))

    B, N, Fin = input_features.shape
    H = params["hidden_features"]
    Fout = params["out_features"]
    assert Fin == params["in_features"]

    # Hypernetwork: one fused Pallas kernel (weights_operation applied inside).
    w1_flat, w2_flat, b1, b2 = hypernet_generate(params, states, weights_operation)
    w1 = w1_flat.reshape(B, Fin, H)
    w2 = w2_flat.reshape(B, H, Fout)

    # Lane-pad H and Fout to multiples of 128 (zero padding) so intermediates,
    # the epilogue and all stores are lane-dense; padding is mathematically
    # inert (padded w2 rows / columns are zero).
    Hp = _round_up(H, _LANE)
    Fp = _round_up(Fout, _LANE)
    if Hp != H:
        w1 = jnp.pad(w1, ((0, 0), (0, 0), (0, Hp - H)))
        w2 = jnp.pad(w2, ((0, 0), (0, Hp - H), (0, 0)))
        b1 = jnp.pad(b1, ((0, 0), (0, Hp - H)))
    if Fp != Fout:
        w2 = jnp.pad(w2, ((0, 0), (0, 0), (0, Fp - Fout)))
        b2 = jnp.pad(b2, ((0, 0), (0, Fp - Fout)))
    b1 = b1.reshape(B, 1, Hp)
    b2 = b2.reshape(B, 1, Fp)

    x_bf = input_features.astype(jnp.bfloat16)
    adj_q = adj.astype(jnp.int8) if adj_is_small_int else adj.astype(jnp.bfloat16)

    # When Fout needs lane padding, emit bf16 from the kernel (half the padded
    # write bytes) and upcast after the slice; otherwise write f32 directly
    # with no post-slice pass.
    out_dtype = jnp.float32 if Fp == Fout else jnp.bfloat16

    if H <= Fin:
        # Re-associated order adj @ (x @ w1): x@w1 computed ONCE per batch here
        # (not per row tile), then streamed as (N, Hp) bf16.
        xw1 = xw1_precompute(x_bf, w1)
        out = gin_conv(adj_q, b1, w2, b2, xw1=xw1, out_dtype=out_dtype)
    else:
        out = gin_conv(adj_q, b1, w2, b2, x=x_bf, w1=w1, out_dtype=out_dtype)

    if Fp != Fout:
        out = out[..., :Fout].astype(jnp.float32)
    return out


# ---------------------------------------------------------------------------
# Pure-JAX f32 reference (for correctness check)
# ---------------------------------------------------------------------------

def _reference(params, x, adj, states, weights_operation=None):
    B, N, Fin = x.shape
    H = params["hidden_features"]
    Fout = params["out_features"]
    agg = jnp.matmul(adj, x)
    w1 = (jnp.maximum(states @ params["w1_a_w"] + params["w1_a_b"], 0.0)
          @ params["w1_b_w"] + params["w1_b_b"]).reshape(B, Fin, H)
    w2 = (jnp.maximum(states @ params["w2_a_w"] + params["w2_a_b"], 0.0)
          @ params["w2_b_w"] + params["w2_b_b"]).reshape(B, H, Fout)
    if weights_operation == "abs":
        w1, w2 = jnp.abs(w1), jnp.abs(w2)
    elif weights_operation == "clamp":
        w1, w2 = jnp.maximum(w1, 0.0), jnp.maximum(w2, 0.0)
    b1 = (states @ params["b1_w"] + params["b1_b"]).reshape(B, 1, H)
    b2 = (states @ params["b2_w"] + params["b2_b"]).reshape(B, 1, Fout)
    h = jnp.matmul(agg, w1) + b1
    h = jnp.where(h >= 0.0, h, 0.01 * h)
    return jnp.matmul(h, w2) + b2


# ---------------------------------------------------------------------------
# Main
# ---------------------------------------------------------------------------

if __name__ == "__main__":
    in_features = 16
    out_features = 16
    state_dim = 8
    hypernet_embed = 32
    B, N = 2, 16

    key = jax.random.PRNGKey(0)
    k_param, k_x, k_adj, k_s = jax.random.split(key, 4)

    params = init_gin_params(k_param, in_features, out_features, state_dim, hypernet_embed)

    x = jax.random.normal(k_x, (B, N, in_features), dtype=jnp.float32)
    adj = (jax.random.uniform(k_adj, (B, N, N)) > 0.5).astype(jnp.float32)
    adj = adj + jnp.eye(N, dtype=jnp.float32)[None]  # self loops, GIN-style
    states = jax.random.normal(k_s, (B, state_dim), dtype=jnp.float32)

    # adjacency is {0,1,2} -> int8 HBM stream is exact.
    out = gin_graph_convolution_forward(params, x, adj, states,
                                        weights_operation=None,
                                        adj_is_small_int=True)
    out = jax.block_until_ready(out)

    ref = _reference(params, x, adj, states, weights_operation=None)
    assert out.shape == (B, N, out_features)
    # bf16 MXU operands / bf16 xw1 & output slab (f32 accumulation) -> loosened
    # tolerance vs the pure-f32 reference; error grows with the K=N reduction.
    assert jnp.allclose(out, ref, atol=5e-2, rtol=5e-2), "mismatch vs pure-JAX reference"

    print("KERNEL_OK")
</pallas_src>

<mosaic_0001>
module attributes {stable_mosaic.version = 11 : i64} {
  func.func @kernel(%arg0: memref<2x8xf32, #tpu.memory_space<vmem>>, %arg1: memref<8x32xf32, #tpu.memory_space<vmem>>, %arg2: memref<1x32xf32, #tpu.memory_space<vmem>>, %arg3: memref<32x256xf32, #tpu.memory_space<vmem>>, %arg4: memref<1x256xf32, #tpu.memory_space<vmem>>, %arg5: memref<8x32xf32, #tpu.memory_space<vmem>>, %arg6: memref<1x32xf32, #tpu.memory_space<vmem>>, %arg7: memref<32x256xf32, #tpu.memory_space<vmem>>, %arg8: memref<1x256xf32, #tpu.memory_space<vmem>>, %arg9: memref<8x16xf32, #tpu.memory_space<vmem>>, %arg10: memref<1x16xf32, #tpu.memory_space<vmem>>, %arg11: memref<8x16xf32, #tpu.memory_space<vmem>>, %arg12: memref<1x16xf32, #tpu.memory_space<vmem>>, %arg13: memref<2x256xbf16, #tpu.memory_space<vmem>>, %arg14: memref<2x256xbf16, #tpu.memory_space<vmem>>, %arg15: memref<2x16xf32, #tpu.memory_space<vmem>>, %arg16: memref<2x16xf32, #tpu.memory_space<vmem>>) attributes {dimension_semantics = [], scalar_prefetch = 0 : i64, scratch_operands = 0 : i64, tpu.core_type = #tpu.core_type<tc>} {
    %c0 = arith.constant 0 : index
    %c0_0 = arith.constant 0 : index
    %0 = vector.load %arg0[%c0, %c0_0] : memref<2x8xf32, #tpu.memory_space<vmem>>, vector<2x8xf32>
    %c0_1 = arith.constant 0 : index
    %c0_2 = arith.constant 0 : index
    %1 = vector.load %arg1[%c0_1, %c0_2] : memref<8x32xf32, #tpu.memory_space<vmem>>, vector<8x32xf32>
    %cst = arith.constant dense<0.000000e+00> : vector<2x32xf32>
    %2 = tpu.matmul %0, %1, %cst {dimension_numbers = #tpu.dot_dimension_numbers<[1], [0], [0], [1], [0, 0, 1, 1], [], []>} : vector<2x8xf32>, vector<8x32xf32>, vector<2x32xf32> -> vector<2x32xf32>
    %c0_3 = arith.constant 0 : index
    %c0_4 = arith.constant 0 : index
    %3 = vector.load %arg2[%c0_3, %c0_4] : memref<1x32xf32, #tpu.memory_space<vmem>>, vector<1x32xf32>
    %4 = vector.broadcast %3 : vector<1x32xf32> to vector<2x32xf32>
    %5 = arith.addf %2, %4 : vector<2x32xf32>
    %cst_5 = arith.constant 0.000000e+00 : f32
    %6 = vector.broadcast %cst_5 : f32 to vector<2x32xf32>
    %7 = arith.maximumf %5, %6 : vector<2x32xf32>
    %c0_6 = arith.constant 0 : index
    %c0_7 = arith.constant 0 : index
    %8 = vector.load %arg3[%c0_6, %c0_7] : memref<32x256xf32, #tpu.memory_space<vmem>>, vector<32x256xf32>
    %cst_8 = arith.constant dense<0.000000e+00> : vector<2x256xf32>
    %9 = tpu.matmul %7, %8, %cst_8 {dimension_numbers = #tpu.dot_dimension_numbers<[1], [0], [0], [1], [0, 0, 1, 1], [], []>} : vector<2x32xf32>, vector<32x256xf32>, vector<2x256xf32> -> vector<2x256xf32>
    %c0_9 = arith.constant 0 : index
    %c0_10 = arith.constant 0 : index
    %10 = vector.load %arg4[%c0_9, %c0_10] : memref<1x256xf32, #tpu.memory_space<vmem>>, vector<1x256xf32>
    %11 = vector.broadcast %10 : vector<1x256xf32> to vector<2x256xf32>
    %12 = arith.addf %9, %11 : vector<2x256xf32>
    %c0_11 = arith.constant 0 : index
    %c0_12 = arith.constant 0 : index
    %13 = vector.load %arg5[%c0_11, %c0_12] : memref<8x32xf32, #tpu.memory_space<vmem>>, vector<8x32xf32>
    %cst_13 = arith.constant dense<0.000000e+00> : vector<2x32xf32>
    %14 = tpu.matmul %0, %13, %cst_13 {dimension_numbers = #tpu.dot_dimension_numbers<[1], [0], [0], [1], [0, 0, 1, 1], [], []>} : vector<2x8xf32>, vector<8x32xf32>, vector<2x32xf32> -> vector<2x32xf32>
    %c0_14 = arith.constant 0 : index
    %c0_15 = arith.constant 0 : index
    %15 = vector.load %arg6[%c0_14, %c0_15] : memref<1x32xf32, #tpu.memory_space<vmem>>, vector<1x32xf32>
    %16 = vector.broadcast %15 : vector<1x32xf32> to vector<2x32xf32>
    %17 = arith.addf %14, %16 : vector<2x32xf32>
    %cst_16 = arith.constant 0.000000e+00 : f32
    %18 = vector.broadcast %cst_16 : f32 to vector<2x32xf32>
    %19 = arith.maximumf %17, %18 : vector<2x32xf32>
    %c0_17 = arith.constant 0 : index
    %c0_18 = arith.constant 0 : index
    %20 = vector.load %arg7[%c0_17, %c0_18] : memref<32x256xf32, #tpu.memory_space<vmem>>, vector<32x256xf32>
    %cst_19 = arith.constant dense<0.000000e+00> : vector<2x256xf32>
    %21 = tpu.matmul %19, %20, %cst_19 {dimension_numbers = #tpu.dot_dimension_numbers<[1], [0], [0], [1], [0, 0, 1, 1], [], []>} : vector<2x32xf32>, vector<32x256xf32>, vector<2x256xf32> -> vector<2x256xf32>
    %c0_20 = arith.constant 0 : index
    %c0_21 = arith.constant 0 : index
    %22 = vector.load %arg8[%c0_20, %c0_21] : memref<1x256xf32, #tpu.memory_space<vmem>>, vector<1x256xf32>
    %23 = vector.broadcast %22 : vector<1x256xf32> to vector<2x256xf32>
    %24 = arith.addf %21, %23 : vector<2x256xf32>
    %c0_22 = arith.constant 0 : index
    %c0_23 = arith.constant 0 : index
    %25 = vector.load %arg9[%c0_22, %c0_23] : memref<8x16xf32, #tpu.memory_space<vmem>>, vector<8x16xf32>
    %cst_24 = arith.constant dense<0.000000e+00> : vector<2x16xf32>
    %26 = tpu.matmul %0, %25, %cst_24 {dimension_numbers = #tpu.dot_dimension_numbers<[1], [0], [0], [1], [0, 0, 1, 1], [], []>} : vector<2x8xf32>, vector<8x16xf32>, vector<2x16xf32> -> vector<2x16xf32>
    %c0_25 = arith.constant 0 : index
    %c0_26 = arith.constant 0 : index
    %27 = vector.load %arg10[%c0_25, %c0_26] : memref<1x16xf32, #tpu.memory_space<vmem>>, vector<1x16xf32>
    %28 = vector.broadcast %27 : vector<1x16xf32> to vector<2x16xf32>
    %29 = arith.addf %26, %28 : vector<2x16xf32>
    %c0_27 = arith.constant 0 : index
    %c0_28 = arith.constant 0 : index
    %30 = vector.load %arg11[%c0_27, %c0_28] : memref<8x16xf32, #tpu.memory_space<vmem>>, vector<8x16xf32>
    %cst_29 = arith.constant dense<0.000000e+00> : vector<2x16xf32>
    %31 = tpu.matmul %0, %30, %cst_29 {dimension_numbers = #tpu.dot_dimension_numbers<[1], [0], [0], [1], [0, 0, 1, 1], [], []>} : vector<2x8xf32>, vector<8x16xf32>, vector<2x16xf32> -> vector<2x16xf32>
    %c0_30 = arith.constant 0 : index
    %c0_31 = arith.constant 0 : index
    %32 = vector.load %arg12[%c0_30, %c0_31] : memref<1x16xf32, #tpu.memory_space<vmem>>, vector<1x16xf32>
    %33 = vector.broadcast %32 : vector<1x16xf32> to vector<2x16xf32>
    %34 = arith.addf %31, %33 : vector<2x16xf32>
    %35 = arith.truncf %12 : vector<2x256xf32> to vector<2x256xbf16>
    %c0_32 = arith.constant 0 : index
    %c0_33 = arith.constant 0 : index
    %36 = vector.load %arg13[%c0_32, %c0_33] : memref<2x256xbf16, #tpu.memory_space<vmem>>, vector<2x256xbf16>
    tpu.vector_store %arg13[%c0_32, %c0_33], %35 {strides = array<i32>} : memref<2x256xbf16, #tpu.memory_space<vmem>>, vector<2x256xbf16>,
    %37 = arith.truncf %24 : vector<2x256xf32> to vector<2x256xbf16>
    %c0_34 = arith.constant 0 : index
    %c0_35 = arith.constant 0 : index
    %38 = vector.load %arg14[%c0_34, %c0_35] : memref<2x256xbf16, #tpu.memory_space<vmem>>, vector<2x256xbf16>
    tpu.vector_store %arg14[%c0_34, %c0_35], %37 {strides = array<i32>} : memref<2x256xbf16, #tpu.memory_space<vmem>>, vector<2x256xbf16>,
    %c0_36 = arith.constant 0 : index
    %c0_37 = arith.constant 0 : index
    %39 = vector.load %arg15[%c0_36, %c0_37] : memref<2x16xf32, #tpu.memory_space<vmem>>, vector<2x16xf32>
    tpu.vector_store %arg15[%c0_36, %c0_37], %29 {strides = array<i32>} : memref<2x16xf32, #tpu.memory_space<vmem>>, vector<2x16xf32>,
    %c0_38 = arith.constant 0 : index
    %c0_39 = arith.constant 0 : index
    %40 = vector.load %arg16[%c0_38, %c0_39] : memref<2x16xf32, #tpu.memory_space<vmem>>, vector<2x16xf32>
    tpu.vector_store %arg16[%c0_38, %c0_39], %34 {strides = array<i32>} : memref<2x16xf32, #tpu.memory_space<vmem>>, vector<2x16xf32>,
    return
  }
}

</mosaic_0001>

<bundles_post_ra>
// kernel: tpu_custom_call.1
= control target key start
LH: loop header
LB: loop body
LE: loop exit
PB: predicated region body
PF: predicated region fallthrough
CT: control target
= control target key end

     0   :  { %s1047_s0 = inlined_call_operand.hbm [shape: f32[2,8], index: 0, kind: input, shape index: {}]   ;;  %s1048_s1 = inlined_call_operand.hbm [shape: f32[8,32], index: 1, kind: input, shape index: {}]   ;;  %s1049_s2 = inlined_call_operand.hbm [shape: f32[1,32], index: 2, kind: input, shape index: {}]   ;;  %s1050_s3 = inlined_call_operand.hbm [shape: f32[32,256], index: 3, kind: input, shape index: {}]   ;;  %s1051_s4 = inlined_call_operand.hbm [shape: f32[1,256], index: 4, kind: input, shape index: {}]   ;;  %s1052_s5 = inlined_call_operand.hbm [shape: f32[8,32], index: 5, kind: input, shape index: {}]   ;;  %s1053_s6 = inlined_call_operand.hbm [shape: f32[1,32], index: 6, kind: input, shape index: {}]   ;;  %s1054_s7 = inlined_call_operand.hbm [shape: f32[32,256], index: 7, kind: input, shape index: {}]   ;;  %s1055_s8 = inlined_call_operand.hbm [shape: f32[1,256], index: 8, kind: input, shape index: {}]   ;;  %s1056_s9 = inlined_call_operand.vmem [shape: f32[8,16], index: 9, kind: input, shape index: {}]   ;;  %s1057_s10 = inlined_call_operand.vmem [shape: f32[1,16], index: 10, kind: input, shape index: {}]   ;;  %s1058_s11 = inlined_call_operand.hbm [shape: f32[8,16], index: 11, kind: input, shape index: {}]   ;;  %s1059_s12 = inlined_call_operand.vmem [shape: f32[1,16], index: 12, kind: input, shape index: {}]   ;;  %s1060_s13 = inlined_call_operand.hbm [shape: bf16[2,256], index: 13, kind: output, shape index: {0}]   ;;  %s1061_s14 = inlined_call_operand.hbm [shape: bf16[2,256], index: 14, kind: output, shape index: {1}]   ;;  %s1062_s15 = inlined_call_operand.hbm [shape: f32[2,16], index: 15, kind: output, shape index: {2}]   ;;  %s1063_s16 = inlined_call_operand.hbm [shape: f32[2,16], index: 16, kind: output, shape index: {3}]  }
   0x1   :  { %1064 = sst [smem:[#allocation34_spill]] %s1047_s0 }
   0x2   :  { %22 = vsyncpa [#allocation3], 0 }
   0x3   :  { %23 = vsyncpa [#allocation6], 0 }
   0x4   :  { %24 = vsyncpa [#allocation9], 0 }
   0x5   :  { %25 = vsyncpa [#allocation12], 0 }
   0x6   :  { %26 = vsyncpa [#allocation15], 0 }
   0x7   :  { %27 = vsyncpa [#allocation18], 0 }
   0x8   :  { %28 = vsyncpa [#allocation4], 0 }
   0x9   :  { %29 = vsyncpa [#allocation21], 0  ;;  %s47_s23 = sshll.u32 %s1048_s1, 4  ;;  %s48_s23 = int_to_ptr.hbm [resolvable:$true] %s47_s23 }
   0xa   :  { %30 = vsyncpa [#allocation24], 0  ;;  %s884_s24 = smov [#allocation5]   ;;  %s68_s28 = sshll.u32 %s1050_s3, 4  ;;  %s69_s28 = int_to_ptr.hbm [resolvable:$true] %s68_s28 }
   0xb   :  { %s49_s25 = sshll.u32 %s884_s24, 4  ;;  %s885_s29 = smov [#allocation8]   ;;  %s50_s25 = int_to_ptr.vmem [resolvable:$true] %s49_s25 }
   0xc   :  { %52 = dma.hbm_to_vmem [thread:$0]  %s48_s23, 128, %s50_s25, [#allocation6]  }
   0xd   :  { %s70_s30 = sshll.u32 %s885_s29, 4  ;;  %s886_s0 = smov 256   ;;  %s71_s30 = int_to_ptr.vmem [resolvable:$true] %s70_s30 }
   0xe   :  { %s887_s17 = smov 16   ;;  %s93_s1 = sshll.u32 %s1052_s5, 4  ;;  %s94_s1 = int_to_ptr.hbm [resolvable:$true] %s93_s1 }
   0xf   :  { %76 = dma.hbm_to_vmem [thread:$0]  %s69_s28, 1024, %s71_s30, [#allocation9], %s886_s0, %s886_s0, %s887_s17  }
  0x10   :  { %s888_s20 = smov [#allocation11]   ;;  %s114_s3 = sshll.u32 %s1054_s7, 4  ;;  %s115_s3 = int_to_ptr.hbm [resolvable:$true] %s114_s3 }
  0x11   :  { %s95_s21 = sshll.u32 %s888_s20, 4  ;;  %s889_s23 = smov [#allocation14]   ;;  %s96_s21 = int_to_ptr.vmem [resolvable:$true] %s95_s21 }
  0x12   :  { %98 = dma.hbm_to_vmem [thread:$0]  %s94_s1, 128, %s96_s21, [#allocation12]  }
  0x13   :  { %s116_s25 = sshll.u32 %s889_s23, 4  ;;  %s1065_s29 = sld [smem:[#allocation34_spill]]  ;;  %s117_s25 = int_to_ptr.vmem [resolvable:$true] %s116_s25 }
  0x14   :  { %122 = dma.hbm_to_vmem [thread:$0]  %s115_s3, 1024, %s117_s25, [#allocation15], %s886_s0, %s886_s0, %s887_s17  }
  0x15   :  { %s58_s18 = sshll.u32 %s1049_s2, 4  ;;  %s890_s19 = smov [#allocation2]   ;;  %s59_s18 = int_to_ptr.hbm [resolvable:$true] %s58_s18 }
  0x16   :  { %s38_s20 = sshll.u32 %s890_s19, 4  ;;  %s891_s7 = smov [#allocation7]   ;;  %s39_s20 = int_to_ptr.vmem [resolvable:$true] %s38_s20 }
  0x17   :  { %s60_s1 = sshll.u32 %s891_s7, 4  ;;  %s82_s24 = sshll.u32 %s1051_s4, 4  ;;  %s61_s1 = int_to_ptr.vmem [resolvable:$true] %s60_s1  ;;  %s83_s24 = int_to_ptr.hbm [resolvable:$true] %s82_s24 }
  0x18   :  { %63 = dma.hbm_to_vmem [thread:$0]  %s59_s18, 16, %s61_s1, [#allocation6]  }
  0x19   :  { %s36_s28 = sshll.u32 %s1065_s29, 4  ;;  %s104_s17 = sshll.u32 %s1053_s6, 4  ;;  %s37_s28 = int_to_ptr.hbm [resolvable:$true] %s36_s28  ;;  %s105_s17 = int_to_ptr.hbm [resolvable:$true] %s104_s17 }
  0x1a   :  { %41 = dma.hbm_to_vmem [thread:$0]  %s37_s28, 32, %s39_s20, [#allocation3]  }
  0x1b   :  { %s892_s3 = smov [#allocation10]   ;;  %s893_s25 = smov [#allocation13]  }
  0x1c   :  { %s84_s2 = sshll.u32 %s892_s3, 4  ;;  %s106_s26 = sshll.u32 %s893_s25, 4  ;;  %s85_s2 = int_to_ptr.vmem [resolvable:$true] %s84_s2  ;;  %s107_s26 = int_to_ptr.vmem [resolvable:$true] %s106_s26 }
  0x1d   :  { %87 = dma.hbm_to_vmem [thread:$0]  %s83_s24, 32, %s85_s2, [#allocation9]  }
  0x1e   :  { %s128_s28 = sshll.u32 %s1055_s8, 4  ;;  %s143_s30 = sshll.u32 %s1058_s11, 4  ;;  %s129_s28 = int_to_ptr.hbm [resolvable:$true] %s128_s28  ;;  %s144_s30 = int_to_ptr.hbm [resolvable:$true] %s143_s30 }
  0x1f   :  { %109 = dma.hbm_to_vmem [thread:$0]  %s105_s17, 16, %s107_s26, [#allocation12]  }
  0x20   :  { %s894_s18 = smov [#allocation16]   ;;  %s895_s19 = smov [#allocation17]  }
  0x21   :  { %s130_s6 = sshll.u32 %s894_s18, 4  ;;  %s145_s20 = sshll.u32 %s895_s19, 4  ;;  %s131_s6 = int_to_ptr.vmem [resolvable:$true] %s130_s6  ;;  %s146_s20 = int_to_ptr.vmem [resolvable:$true] %s145_s20 }
  0x22   :  { %133 = dma.hbm_to_vmem [thread:$0]  %s129_s28, 32, %s131_s6, [#allocation15]  }
  0x23   :  { %148 = dma.hbm_to_vmem [thread:$0]  %s144_s30, 128, %s146_s20, [#allocation18]  }
  0x24   :  { %866 = dma.done.wait [#allocation3], 32  }
  0x25   :  { %867 = vsyncadd [#allocation3], 4294967264 }
  0x26   :  { %868 = dma.done.wait [#allocation6], 144  }
  0x27   :  { %869 = vsyncadd [#allocation6], 4294967152 }
  0x28   :  { %870 = dma.done.wait [#allocation9], 1056  }
  0x29   :  { %871 = vsyncadd [#allocation9], 4294966240 }
  0x2a   :  { %872 = dma.done.wait [#allocation12], 144  }
  0x2b   :  { %873 = vsyncadd [#allocation12], 4294967152 }
  0x2c   :  { %874 = dma.done.wait [#allocation15], 1056  }
  0x2d   :  { %875 = vsyncadd [#allocation15], 4294966240 }
  0x2e   :  { %876 = dma.done.wait [#allocation18], 128  }
  0x2f   :  { %877 = vsyncadd [#allocation18], 4294967168  ;;  %vm197_vm0 = vcmask 64512   ;;  %v192_v0 = vld [vmem:[#allocation5] sm:$0xff]  ;;  %v280_v1 = vld [vmem:[#allocation11] sm:$0xff]  ;;  %vm236_vm1 = vcmask 261120  }
  0x30   :  { %v191_v2 = vld [vmem:[#allocation2] sm:$0x3]  ;;  %216 = vmatpush.msra.mxu0 %v192_v0  ;;  %300 = vmatpush.msra.mxu3 %v280_v1  ;;  %v229_v3 = vld [vmem:[#allocation8 + $0x38] sm:$0xff]  ;;  %v227_v4 = vld [vmem:[#allocation8 + $0x28] sm:$0xff]  ;;  %vm430_vm2 = vcmask 123904   ;;  %s896_s1 = smov [#allocation19]  }
  0x31   :  { %502 = vmatmul.msk.f32.vlgmr.msra.gmra.mxu0 %vm197_vm0, %v191_v2  ;;  %505 = vmatmul.msk.f32.vlgmr.msra.gmra.mxu3 %vm197_vm0, %v191_v2  ;;  %v228_v5 = vld [vmem:[#allocation8 + $0x30] sm:$0xff]  ;;  %v225_v6 = vld [vmem:[#allocation8 + $0x18] sm:$0xff]  ;;  %v313_v7 = vld [vmem:[#allocation14 + $0x38] sm:$0xff]  ;;  %s438_s21 = sshll.u32 %s896_s1, 4  ;;  %s440_s23 = sshll.u32 %s1060_s13, 4  ;;  %vm416_vm3 = vcmask 1040384   ;;  %s439_s21 = int_to_ptr.vmem [resolvable:$true] %s438_s21  ;;  %s441_s23 = int_to_ptr.hbm [resolvable:$true] %s440_s23 }
  0x32   :  { %272 = vmatpush.msra.mxu2 %v229_v3  ;;  %252 = vmatpush.msra.mxu1 %v228_v5  ;;  %v226_v8 = vld [vmem:[#allocation8 + $0x20] sm:$0xff]  ;;  %v223_v9 = vld [vmem:[#allocation8 + $0x8] sm:$0xff]  ;;  %v311_v11 = vld [vmem:[#allocation14 + $0x28] sm:$0xff]  ;;  %s897_s0 = smov [#allocation20]   ;;  %s473_s2 = sshll.u32 %s1063_s16, 4  ;;  %s474_s2 = int_to_ptr.hbm [resolvable:$true] %s473_s2 }
  0x33   :  { %355 = vmatpush.msrb.mxu3 %v313_v7  ;;  %v312_v10 = vld [vmem:[#allocation14 + $0x30] sm:$0xff]  ;;  %v224_v12 = vld [vmem:[#allocation8 + $0x10] sm:$0xff]  ;;  %v309_v14 = vld [vmem:[#allocation14 + $0x18] sm:$0xff]  ;;  %s898_s27 = smov [#allocation23]   ;;  %s451_s4 = sshll.u32 %s1061_s14, 4  ;;  %s452_s4 = int_to_ptr.hbm [resolvable:$true] %s451_s4 }
  0x34   :  { %273 = vmatpush.msra.mxu2 %v227_v4  ;;  %253 = vmatpush.msra.mxu1 %v226_v8  ;;  %v310_v13 = vld [vmem:[#allocation14 + $0x20] sm:$0xff]  ;;  %v222_v15 = vld [vmem:[#allocation8] sm:$0xff]  ;;  %v307_v17 = vld [vmem:[#allocation14 + $0x8] sm:$0xff]  ;;  %s471_s29 = sshll.u32 %s898_s27, 4  ;;  %s462_s18 = sshll.u32 %s1062_s15, 4  ;;  %s472_s29 = int_to_ptr.vmem [resolvable:$true] %s471_s29  ;;  %s463_s18 = int_to_ptr.hbm [resolvable:$true] %s462_s18 }
  0x35   :  { %335 = vmatpush.msrb.mxu0 %v312_v10  ;;  %356 = vmatpush.msrb.mxu3 %v311_v11  ;;  %v308_v16 = vld [vmem:[#allocation14 + $0x10] sm:$0xff]  ;;  %v388_v18 = vld [vmem:[#allocation17] sm:$0xff]  ;;  %v527_v25 = vld [vmem:[#allocation13] ss:$0 sm:$0xff] }
  0x36   :  { %274 = vmatpush.msra.mxu2 %v225_v6  ;;  %254 = vmatpush.msra.mxu1 %v224_v12  ;;  %v306_v19 = vld [vmem:[#allocation14] sm:$0xff]  ;;  %v526_v21 = vld [vmem:[#allocation7] ss:$0 sm:$0xff]  ;;  %v230_v29 = vld [vmem:[#allocation10] sm:$0x3] }
  0x37   :  { %336 = vmatpush.msrb.mxu0 %v310_v13  ;;  %357 = vmatpush.msrb.mxu3 %v309_v14  ;;  %v363_v20 = vld [vmem:[%s1056_s9] sm:$0xff]  ;;  %v232_v31 = vperm.slane %v230_v29, 0  ;;  %v233_v32 = vperm.slane %v230_v29, 1 }
  0x38   :  { %275 = vmatpush.msra.mxu2 %v223_v9  ;;  %255 = vmatpush.msra.mxu1 %v222_v15  ;;  %v528_v33 = vld [vmem:[%s1057_s10] ss:$0 sm:$0xff]  ;;  %s1028_s10 = sshll.u32 %s897_s0, 4  ;;  %s450_s10 = int_to_ptr.vmem [resolvable:$true] %s1028_s10 }
  0x39   :  { %337 = vmatpush.msrb.mxu0 %v308_v16  ;;  %358 = vmatpush.msrb.mxu3 %v307_v17  ;;  %v314_v35 = vld [vmem:[#allocation16] sm:$0x3] }
  0x3a   :  { %408 = vmatpush.msrb.mxu2 %v388_v18  ;;  %383 = vmatpush.msrb.mxu1 %v363_v20  ;;  %v316_v40 = vperm.slane %v314_v35, 0  ;;  %v317_v41 = vperm.slane %v314_v35, 1  ;;  %v529_v45 = vld [vmem:[%s1059_s12] ss:$0 sm:$0xff]  ;;  %s899_s12 = smov [#allocation22]  }
  0x3b   :  { %338 = vmatpush.msrb.mxu0 %v306_v19  ;;  %s460_s16 = sshll.u32 %s899_s12, 4  ;;  %s461_s16 = int_to_ptr.vmem [resolvable:$true] %s460_s16 }
  0xae   :  { %v218_v22 = vpop.f32.mrf.mxu0 }
  0xaf   :  { %v219_v23 = vadd.f32 %v526_v21, %v218_v22 }
  0xb1   :  { %v221_v24 = vmax.f32 %v219_v23, 0.0 }
  0xb3   :  { %504 = vmatmul.msk.f32.vlgmr.msra.gmra.mxu2 %vm236_vm1, %v221_v24  ;;  %503 = vmatmul.msk.f32.vlgmr.msra.gmra.mxu1 %vm236_vm1, %v221_v24 }
  0xb4   :  { %v302_v26 = vpop.f32.mrf.mxu3 }
  0xb5   :  { %v303_v27 = vadd.f32 %v527_v25, %v302_v26 }
  0xb7   :  { %v305_v28 = vmax.f32 %v303_v27, 0.0 }
  0xb9   :  { %506 = vmatmul.msk.f32.vlgmr.msrb.gmra.mxu0 %vm236_vm1, %v305_v28  ;;  %507 = vmatmul.msk.f32.vlgmr.msrb.gmra.mxu3 %vm236_vm1, %v305_v28 }
  0xbb   :  { %509 = vmatmul.msk.f32.vlgmr.msrb.gmra.mxu2 %vm197_vm0, %v191_v2  ;;  %508 = vmatmul.msk.f32.vlgmr.msrb.gmra.mxu1 %vm197_vm0, %v191_v2 }
 0x130   :  { %v257_v30 = vpop.f32.mrf.mxu1 }
 0x131   :  { %v258_v36 = vadd.f32 %v257_v30, %v232_v31 }
 0x136   :  { %v277_v34 = vpop.f32.mrf.mxu2  ;;  %v340_v43 = vpop.f32.mrf.mxu0 }
 0x137   :  { %v278_v37 = vadd.f32 %v277_v34, %v233_v32  ;;  %v341_v47 = vadd.f32 %v340_v43, %v316_v40 }
 0x138   :  { %v385_v38 = vpop.f32.mrf.mxu1 }
 0x139   :  { %v413_v39 = vpack.c.bf16 %v278_v37, %v258_v36  ;;  %v386_v42 = vadd.f32 %v528_v33, %v385_v38 }
 0x13b   :  { %v415_v44 = vrot.slane %v413_v39, 3  ;;  %431 = vst.msk [vmem:[#allocation22] sm:$0x3] %vm430_vm2, %v386_v42 }
 0x13c   :  { %v360_v46 = vpop.f32.mrf.mxu3 }
 0x13d   :  { %v361_v48 = vadd.f32 %v360_v46, %v317_v41  ;;  %v419_v49 = vsel %vm416_vm3, %v413_v39, %v415_v44 }
 0x13e   :  { %v410_v50 = vpop.f32.mrf.mxu2  ;;  %421 = vst [vmem:[#allocation19] sm:$0x3] %v419_v49 }
 0x13f   :  { %v422_v51 = vpack.c.bf16 %v361_v48, %v341_v47  ;;  %v411_v52 = vadd.f32 %v529_v45, %v410_v50  ;;  %443 = dma.vmem_to_hbm [thread:$0]  %s439_s21, 32, %s441_s23, [#allocation4]  }
 0x141   :  { %v424_v53 = vrot.slane %v422_v51, 3  ;;  %432 = vst.msk [vmem:[#allocation23] sm:$0x3] %vm430_vm2, %v411_v52 }
 0x142   :  { %476 = dma.vmem_to_hbm [thread:$0]  %s472_s29, 32, %s474_s2, [#allocation24]  }
 0x143   :  { %v427_v54 = vsel %vm416_vm3, %v422_v51, %v424_v53 }
 0x144   :  { %429 = vst [vmem:[#allocation20] sm:$0x3] %v427_v54 }
 0x145   :  { %454 = dma.vmem_to_hbm [thread:$0]  %s450_s10, 32, %s452_s4, [#allocation21]  }
 0x146   :  { %465 = dma.vmem_to_hbm [thread:$0]  %s461_s16, 32, %s463_s18, [#allocation21]  }
 0x147   :  { %878 = dma.done.wait [#allocation4], 32  }
 0x148   :  { %879 = vsyncadd [#allocation4], 4294967264 }
 0x149   :  { %880 = dma.done.wait [#allocation21], 64  }
 0x14a   :  { %881 = vsyncadd [#allocation21], 4294967232 }
 0x14b   :  { %882 = dma.done.wait [#allocation24], 32  }
 0x14c   :  { %883 = vsyncadd [#allocation24], 4294967264 }
 0x14d   :  { %493 = vsyncpa [#allocation3], 1 }
 0x14e   :  { %494 = vsyncpa [#allocation6], 1 }
 0x14f   :  { %495 = vsyncpa [#allocation9], 1 }
 0x150   :  { %496 = vsyncpa [#allocation12], 1 }
 0x151   :  { %497 = vsyncpa [#allocation15], 1 }
 0x152   :  { %498 = vsyncpa [#allocation18], 1 }
 0x153   :  { %499 = vsyncpa [#allocation4], 1 }
 0x154   :  { %500 = vsyncpa [#allocation21], 1 }
 0x155   :  { %501 = vsyncpa [#allocation24], 1 }

</bundles_post_ra>
